<compile_context>
chip_gen: v7x
topology: tpu7x:2x2x1
jax: 0.10.0
libtpu: 0.0.40
codegen_flags: <defaults>
</compile_context>

<pallas_src>
import functools

import jax
import jax.numpy as jnp
import numpy as np
from jax.experimental import pallas as pl
from jax.experimental.pallas import tpu as pltpu

KS = (3, 5, 7, 9)       # branch kernel sizes (assumed k1..k4)
PS = (1, 2, 3, 4)       # branch paddings   (assumed p1..p4 = k//2)
KMAX = 9
PMAX = 4
BN_EPS = 1e-5


# ----------------------------- Pallas kernel ---------------------------------
def _block_kernel(patches_ref, xsc_ref,
                  w1_ref, w2_ref, bn2s_ref, bn2b_ref,
                  wse1_ref, wse2_ref, *rest,
                  has_proj, lp, lout, nb):
    if has_proj:
        wsc_ref, bsc_ref, out_ref, hpad_ref = rest
    else:
        out_ref, hpad_ref = rest

    C = out_ref.shape[0]          # Cout
    W = out_ref.shape[-1]         # NB * Lpad  (lane-dense: batch packed into lanes)

    # --- BranchConv1D + BN1(scale folded into W1, bias via mask row) + ReLU --------
    # Dropout == identity at inference.  Halo columns of every per-batch frame come
    # out exactly 0 (zero patch columns, zero mask row), which is the zero padding
    # the second conv needs.
    h = jnp.maximum(
        jnp.dot(w1_ref[...], patches_ref[...], preferred_element_type=jnp.float32),
        0.0)                                                    # (C, W) f32

    # --- ResBranchConv1D: 4 kernel sizes x 9 taps fused into ONE bf16 matmul -------
    # bf16 scratch; only the 2*PMAX halo columns are zeroed, interior overwritten.
    hpad_ref[:, :PMAX] = jnp.zeros((C, PMAX), jnp.bfloat16)
    hpad_ref[:, PMAX + W:PMAX + W + PMAX] = jnp.zeros((C, PMAX), jnp.bfloat16)
    hpad_ref[:, PMAX:PMAX + W] = h.astype(jnp.bfloat16)
    # slab rows [t*C:(t+1)*C] hold h shifted by (t - PMAX) columns; per-frame zero
    # halos make this 'same' padding with no cross-batch bleed.
    slab = jnp.concatenate([hpad_ref[:, t:t + W] for t in range(KMAX)], axis=0)
    z = jnp.dot(w2_ref[...], slab, preferred_element_type=jnp.float32)   # (C, W) f32
    h2 = jnp.maximum((h + z) * bn2s_ref[...] + bn2b_ref[...], 0.0)

    # --- ResSELayer1D: per-frame interior mean, Linear/ReLU/Linear/Sigmoid,
    # broadcast back per frame, x * (1 + alpha).  Pool / broadcast masks are built
    # in-kernel from iota (bf16, no HBM input, no double-buffered VMEM).
    col = jax.lax.broadcasted_iota(jnp.int32, (W, nb), 0)
    frm = jax.lax.broadcasted_iota(jnp.int32, (W, nb), 1)
    within = col - frm * lp                      # position inside frame `frm`
    pool = jnp.where((within >= PMAX) & (within < PMAX + lout),
                     1.0, 0.0).astype(jnp.bfloat16)                      # (W, NB)
    alpha = jnp.dot(h2.astype(jnp.bfloat16), pool,
                    preferred_element_type=jnp.float32) * (1.0 / lout)   # (C, NB)
    s1 = jnp.maximum(jnp.dot(wse1_ref[...], alpha,
                             preferred_element_type=jnp.float32), 0.0)   # (Cr, NB)
    s2 = jax.nn.sigmoid(jnp.dot(wse2_ref[...], s1,
                                preferred_element_type=jnp.float32))     # (C, NB)
    colb = jax.lax.broadcasted_iota(jnp.int32, (nb, W), 1)
    rowb = jax.lax.broadcasted_iota(jnp.int32, (nb, W), 0)
    offb = colb - rowb * lp
    bcast = jnp.where((offb >= 0) & (offb < lp),
                      1.0, 0.0).astype(jnp.bfloat16)                     # (NB, W)
    gate = jnp.dot(s2.astype(jnp.bfloat16), bcast,
                   preferred_element_type=jnp.float32)                   # (C, W)
    op = h2 * (1.0 + gate)

    # --- shortcut: [MaxPool done in wrapper] -> (1x1 conv + folded BN) or identity --
    if has_proj:
        sc = jnp.dot(wsc_ref[...], xsc_ref[...],
                     preferred_element_type=jnp.float32) + bsc_ref[...]
    else:
        sc = xsc_ref[...].astype(jnp.float32)

    out_ref[...] = jnp.maximum(op + sc, 0.0)


# ------------------------------- JAX glue -------------------------------------
def maxpool1d_ceil(x, k):
    B, C, L = x.shape
    Lout = -(-L // k)
    pad = Lout * k - L
    xp = jnp.pad(x, ((0, 0), (0, 0), (0, pad)), constant_values=-jnp.inf)
    return xp.reshape(B, C, Lout, k).max(-1)


def _im2col_flat(x, stride, Lout, Lp):
    """x:(B,Cin,L) -> patches (Cin*9+1, B*Lp): per-batch padded frame + bias-mask row."""
    B, Cin, L = x.shape
    xp = jnp.pad(x, ((0, 0), (0, 0), (PMAX, PMAX)))
    idx = jnp.arange(Lout)[:, None] * stride + jnp.arange(KMAX)[None, :]   # (Lout, 9)
    p = xp[:, :, idx]                                   # (B, Cin, Lout, 9)
    p = jnp.transpose(p, (1, 3, 0, 2))                  # (Cin, 9, B, Lout)
    p = p.reshape(Cin * KMAX, B, Lout)
    p = jnp.pad(p, ((0, 0), (0, 0), (PMAX, PMAX)))      # embed in per-batch Lp frame
    p = p.reshape(Cin * KMAX, B * Lp)
    mask = jnp.zeros((1, B, Lp), x.dtype).at[:, :, PMAX:PMAX + Lout].set(1.0)
    return jnp.concatenate([p, mask.reshape(1, B * Lp)], axis=0)


def _shortcut_flat(x, stride, Lout, Lp):
    """Shortcut input in the same flat per-batch padded frame: (Cin, B*Lp)."""
    xs = maxpool1d_ceil(x, stride) if stride != 1 else x        # (B, Cin, Lout)
    B, Cin, _ = xs.shape
    xs = jnp.pad(xs, ((0, 0), (0, 0), (PMAX, PMAX)))            # (B, Cin, Lp)
    return jnp.transpose(xs, (1, 0, 2)).reshape(Cin, B * Lp)


def _tpu_budgets():
    """(vmem_limit_bytes, target_lanes) sized per TPU generation."""
    phys = 128 * 1024 * 1024
    try:
        phys = int(getattr(pltpu.get_tpu_info(), "vmem_capacity_bytes", phys) or phys)
    except Exception:
        pass
    if phys <= 64 * 1024 * 1024:            # v7x-class: 64 MiB per TensorCore
        return 44 * 1024 * 1024, 4096
    return 96 * 1024 * 1024, 8192           # v5e / v6e: 128 MiB physical VMEM


def _estimate_vmem_bytes(nb, lp, cin, cout):
    """Rough per-grid-step VMEM footprint (feasibility check, conservative)."""
    w = nb * lp
    stream = 2 * ((cin * KMAX + 1) * w * 2 + cin * w * 2 + cout * w * 4)  # dbl-buffered blocks
    scratch = cout * (w + 2 * PMAX) * 2                                   # bf16 hpad
    temps = cout * w * (4 + 2 * KMAX + 12)                                # h, bf16 slab, z/h2/gate
    masks = w * 128 * 6                                                   # lane-padded iota masks
    weights = 4 * (cout * (cin * KMAX + 1) + cout * cout * KMAX)
    return stream + scratch + temps + masks + weights


def _pick_batch_tile(B, lp, cin, cout, target_lanes, vmem_budget):
    """Batch tile NB: legal lane block, VMEM-feasible, prefer >=2 grid steps."""
    legal = [nb for nb in range(1, B + 1)
             if B % nb == 0 and (nb == B or (nb * lp) % 128 == 0)]
    fits = [nb for nb in legal if _estimate_vmem_bytes(nb, lp, cin, cout) <= vmem_budget]
    cands = fits if fits else legal                   # smallest legal tile as last resort
    multi = [nb for nb in cands if nb < B and nb * lp <= target_lanes]
    if multi:                                         # >=2 grid steps: megacore + DMA overlap
        return max(multi)
    small = [nb for nb in cands if nb * lp <= target_lanes]
    return max(small) if small else min(cands)


def res_basic_block_1d(x, kp, stride):
    B, Cin, L = x.shape
    Cout = kp['w1_aug'].shape[0]
    has_proj = 'wsc_f' in kp

    Lout = (L + 2 * PMAX - KMAX) // stride + 1
    assert Lout == -(-L // stride), "conv / ceil-maxpool output lengths must match"
    Lp = Lout + 2 * PMAX

    vmem_limit, target_lanes = _tpu_budgets()
    NB = _pick_batch_tile(B, Lp, Cin, Cout, target_lanes, vmem_limit)
    n_tiles = B // NB
    Wt = NB * Lp

    patches = _im2col_flat(x, stride, Lout, Lp).astype(jnp.bfloat16)
    xsc = _shortcut_flat(x, stride, Lout, Lp)
    xsc = xsc.astype(jnp.bfloat16) if has_proj else xsc.astype(jnp.float32)

    def fullspec(shape):
        return pl.BlockSpec(shape, lambda i, _n=len(shape): (0,) * _n)

    in_arrays = [patches, xsc,
                 kp['w1_aug'], kp['w2_flat'], kp['bn2s'], kp['bn2b'],
                 kp['wse1'], kp['wse2']]
    in_specs = [
        pl.BlockSpec((Cin * KMAX + 1, Wt), lambda i: (0, i)),
        pl.BlockSpec((xsc.shape[0], Wt), lambda i: (0, i)),
        fullspec(kp['w1_aug'].shape), fullspec(kp['w2_flat'].shape),
        fullspec(kp['bn2s'].shape), fullspec(kp['bn2b'].shape),
        fullspec(kp['wse1'].shape), fullspec(kp['wse2'].shape),
    ]
    if has_proj:
        in_arrays += [kp['wsc_f'], kp['bsc_f']]
        in_specs += [fullspec(kp['wsc_f'].shape), fullspec(kp['bsc_f'].shape)]

    # advisory cost hint so XLA schedules the wrapper-side im2col around the call
    flops = 2 * B * Lp * Cout * ((Cin * KMAX + 1) + Cout * KMAX + 2 * NB)
    if has_proj:
        flops += 2 * B * Lp * Cout * Cin
    bytes_accessed = (patches.size * 2 + xsc.size * xsc.dtype.itemsize
                      + Cout * B * Lp * 4
                      + sum(int(np.prod(a.shape)) * a.dtype.itemsize
                            for a in in_arrays[2:]))
    cost = pl.CostEstimate(flops=int(flops), transcendentals=int(B * Cout),
                           bytes_accessed=int(bytes_accessed))

    out = pl.pallas_call(
        functools.partial(_block_kernel, has_proj=has_proj,
                          lp=Lp, lout=Lout, nb=NB),
        out_shape=jax.ShapeDtypeStruct((Cout, B * Lp), jnp.float32),
        grid_spec=pltpu.PrefetchScalarGridSpec(
            num_scalar_prefetch=0,
            grid=(n_tiles,),
            in_specs=in_specs,
            out_specs=pl.BlockSpec((Cout, Wt), lambda i: (0, i)),
            scratch_shapes=[pltpu.VMEM((Cout, Wt + 2 * PMAX), jnp.bfloat16)]),
        compiler_params=pltpu.CompilerParams(
            dimension_semantics=("parallel",),
            vmem_limit_bytes=vmem_limit),
        cost_estimate=cost,
    )(*in_arrays)

    # strip per-batch halo columns and return NCL layout (B, Cout, Lout)
    out = out.reshape(Cout, B, Lp)[:, :, PMAX:PMAX + Lout]
    return jnp.transpose(out, (1, 0, 2))


# --------------------------- parameter builders --------------------------------
def bn_fold(gamma, beta, mean, var):
    scale = gamma / jnp.sqrt(var + BN_EPS)
    bias = beta - mean * scale
    return scale, bias


def combine_branch_weights(ws):
    """Embed each branch weight (Cb, Cin, k) centered into a 9-tap frame; concat Cout."""
    out = []
    for w, k, p in zip(ws, KS, PS):
        Cb, Cin, _ = w.shape
        w9 = jnp.zeros((Cb, Cin, KMAX), w.dtype).at[:, :, PMAX - p:PMAX - p + k].set(w)
        out.append(w9)
    return jnp.concatenate(out, axis=0)                  # (Cout, Cin, 9)


def make_params(key, cin, cout, reduction=16):
    C = cout // 4
    Cr = max(cout // reduction, 1)
    ki = iter(jax.random.split(key, 16))

    def bn(k):
        a, b, c, d = jax.random.split(k, 4)
        gamma = jax.random.uniform(a, (cout,), minval=0.5, maxval=1.5)
        beta = jax.random.normal(b, (cout,)) * 0.1
        mean = jax.random.normal(c, (cout,)) * 0.1
        var = jax.random.uniform(d, (cout,), minval=0.5, maxval=1.5)
        return bn_fold(gamma, beta, mean, var)

    p = {}
    p['w1'] = [jax.random.normal(next(ki), (C, cin, k), jnp.float32) * 0.1 for k in KS]
    p['w2'] = [jax.random.normal(next(ki), (C, cout, k), jnp.float32) * 0.1 for k in KS]
    p['bn1s'], p['bn1b'] = bn(next(ki))
    p['bn2s'], p['bn2b'] = bn(next(ki))
    p['wse1'] = jax.random.normal(next(ki), (Cr, cout), jnp.float32) * 0.1
    p['wse2'] = jax.random.normal(next(ki), (cout, Cr), jnp.float32) * 0.1
    if cin != cout:
        p['wsc'] = jax.random.normal(next(ki), (cout, cin), jnp.float32) * 0.1
        p['bsc'] = jax.random.normal(next(ki), (cout,), jnp.float32) * 0.1
        p['bnscs'], p['bnscb'] = bn(next(ki))
    return p


def prepare_kernel_params(p, cin, cout):
    """Fold BN into weights, pack convs into single-matmul forms, cast matmul operands."""
    kp = {}
    w1c = combine_branch_weights(p['w1']) * p['bn1s'][:, None, None]   # fold BN1 scale
    w1_aug = jnp.concatenate(
        [w1c.reshape(cout, cin * KMAX), p['bn1b'][:, None]], axis=1)   # bias via mask row
    kp['w1_aug'] = w1_aug.astype(jnp.bfloat16)                         # (Cout, Cin*9+1)

    w2c = combine_branch_weights(p['w2'])                              # (Cout, Cout, 9)
    kp['w2_flat'] = jnp.transpose(w2c, (0, 2, 1)).reshape(
        cout, cout * KMAX).astype(jnp.bfloat16)                        # [co, t*C + ci]

    kp['bn2s'] = p['bn2s'][:, None]                                    # (Cout, 1) f32
    kp['bn2b'] = p['bn2b'][:, None]
    kp['wse1'] = p['wse1']                                             # tiny -> keep f32
    kp['wse2'] = p['wse2']
    if 'wsc' in p:
        kp['wsc_f'] = (p['wsc'] * p['bnscs'][:, None]).astype(jnp.bfloat16)
        kp['bsc_f'] = (p['bsc'] * p['bnscs'] + p['bnscb'])[:, None]    # (Cout, 1) f32
    return kp


# --------------------------- pure-JAX reference --------------------------------
def _conv1d(x, w, stride, pad):
    return jax.lax.conv_general_dilated(
        x, w, window_strides=(stride,), padding=[(pad, pad)],
        dimension_numbers=('NCH', 'OIH', 'NCH'),
        precision=jax.lax.Precision.HIGHEST)


def ref_forward(x, p, stride):
    y1 = jnp.concatenate([_conv1d(x, p['w1'][i], stride, PS[i]) for i in range(4)], axis=1)
    h = jax.nn.relu(y1 * p['bn1s'][None, :, None] + p['bn1b'][None, :, None])
    z = jnp.concatenate([_conv1d(h, p['w2'][i], 1, PS[i]) for i in range(4)], axis=1)
    h2 = jax.nn.relu((h + z) * p['bn2s'][None, :, None] + p['bn2b'][None, :, None])
    alpha = h2.mean(-1)                                           # (B, C)
    s = jax.nn.sigmoid(jax.nn.relu(alpha @ p['wse1'].T) @ p['wse2'].T)
    op = h2 * (1.0 + s[:, :, None])
    xsc = maxpool1d_ceil(x, stride) if stride != 1 else x
    if 'wsc' in p:
        sc = _conv1d(xsc, p['wsc'][:, :, None], 1, 0) + p['bsc'][None, :, None]
        sc = sc * p['bnscs'][None, :, None] + p['bnscb'][None, :, None]
    else:
        sc = xsc
    return jax.nn.relu(op + sc)


if __name__ == "__main__":
    B, Cin, Cout, L, stride = 2, 8, 32, 16, 2
    # drop_out_rate is irrelevant at inference (Dropout == identity)

    key = jax.random.PRNGKey(0)
    kx, kp_key = jax.random.split(key)
    x = jax.random.normal(kx, (B, Cin, L), jnp.float32)
    params = make_params(kp_key, Cin, Cout)
    kparams = prepare_kernel_params(params, Cin, Cout)

    out = jax.block_until_ready(res_basic_block_1d(x, kparams, stride))
    ref = jax.block_until_ready(ref_forward(x, params, stride))
    # bf16 matmul operands (f32 accumulation) -> loose-but-bug-catching tolerance
    np.testing.assert_allclose(np.asarray(out), np.asarray(ref), rtol=5e-2, atol=5e-2)
    print("KERNEL_OK")
</pallas_src>

<mosaic_0001>
module attributes {stable_mosaic.version = 11 : i64} {
  func.func @_block_kernel(%arg0: i32, %arg1: memref<73x32xbf16, #tpu.memory_space<vmem>>, %arg2: memref<8x32xbf16, #tpu.memory_space<vmem>>, %arg3: memref<32x73xbf16, #tpu.memory_space<vmem>>, %arg4: memref<32x288xbf16, #tpu.memory_space<vmem>>, %arg5: memref<32x1xf32, #tpu.memory_space<vmem>>, %arg6: memref<32x1xf32, #tpu.memory_space<vmem>>, %arg7: memref<2x32xf32, #tpu.memory_space<vmem>>, %arg8: memref<32x2xf32, #tpu.memory_space<vmem>>, %arg9: memref<32x8xbf16, #tpu.memory_space<vmem>>, %arg10: memref<32x1xf32, #tpu.memory_space<vmem>>, %arg11: memref<32x32xf32, #tpu.memory_space<vmem>>, %arg12: memref<32x40xbf16, #tpu.memory_space<vmem>>) attributes {dimension_semantics = [#tpu.dimension_semantics<parallel>], iteration_bounds = array<i64: 1>, scalar_prefetch = 0 : i64, scratch_operands = 1 : i64, tpu.core_type = #tpu.core_type<tc>, window_params = [{transform_indices = @transform_0, window_bounds = array<i64: 73, 32>}, {transform_indices = @transform_1, window_bounds = array<i64: 8, 32>}, {pipeline_mode = #tpu.pipeline_mode<synchronous>, transform_indices = @transform_2, window_bounds = array<i64: 32, 73>}, {pipeline_mode = #tpu.pipeline_mode<synchronous>, transform_indices = @transform_3, window_bounds = array<i64: 32, 288>}, {pipeline_mode = #tpu.pipeline_mode<synchronous>, transform_indices = @transform_4, window_bounds = array<i64: 32, 1>}, {pipeline_mode = #tpu.pipeline_mode<synchronous>, transform_indices = @transform_5, window_bounds = array<i64: 32, 1>}, {pipeline_mode = #tpu.pipeline_mode<synchronous>, transform_indices = @transform_6, window_bounds = array<i64: 2, 32>}, {pipeline_mode = #tpu.pipeline_mode<synchronous>, transform_indices = @transform_7, window_bounds = array<i64: 32, 2>}, {pipeline_mode = #tpu.pipeline_mode<synchronous>, transform_indices = @transform_8, window_bounds = array<i64: 32, 8>}, {pipeline_mode = #tpu.pipeline_mode<synchronous>, transform_indices = @transform_9, window_bounds = array<i64: 32, 1>}, {transform_indices = @transform_10, window_bounds = array<i64: 32, 32>}]} {
    %c0 = arith.constant 0 : index
    %c0_0 = arith.constant 0 : index
    %0 = vector.load %arg3[%c0, %c0_0] : memref<32x73xbf16, #tpu.memory_space<vmem>>, vector<32x73xbf16>
    %c0_1 = arith.constant 0 : index
    %c0_2 = arith.constant 0 : index
    %1 = vector.load %arg1[%c0_1, %c0_2] : memref<73x32xbf16, #tpu.memory_space<vmem>>, vector<73x32xbf16>
    %cst = arith.constant dense<0.000000e+00> : vector<32x32xf32>
    %2 = tpu.matmul %0, %1, %cst {dimension_numbers = #tpu.dot_dimension_numbers<[1], [0], [0], [1], [0, 0, 1, 1], [], []>} : vector<32x73xbf16>, vector<73x32xbf16>, vector<32x32xf32> -> vector<32x32xf32>
    %cst_3 = arith.constant 0.000000e+00 : f32
    %3 = vector.broadcast %cst_3 : f32 to vector<32x32xf32>
    %4 = arith.maximumf %2, %3 : vector<32x32xf32>
    %cst_4 = arith.constant 0.000000e+00 : bf16
    %5 = vector.broadcast %cst_4 : bf16 to vector<32x4xbf16>
    %c0_5 = arith.constant 0 : index
    %c0_6 = arith.constant 0 : index
    %6 = vector.load %arg12[%c0_5, %c0_6] : memref<32x40xbf16, #tpu.memory_space<vmem>>, vector<32x4xbf16>
    tpu.vector_store %arg12[%c0_5, %c0_6], %5 {strides = array<i32>} : memref<32x40xbf16, #tpu.memory_space<vmem>>, vector<32x4xbf16>,
    %cst_7 = arith.constant 0.000000e+00 : bf16
    %7 = vector.broadcast %cst_7 : bf16 to vector<32x4xbf16>
    %c0_8 = arith.constant 0 : index
    %c36 = arith.constant 36 : index
    %8 = vector.load %arg12[%c0_8, %c36] : memref<32x40xbf16, #tpu.memory_space<vmem>>, vector<32x4xbf16>
    tpu.vector_store %arg12[%c0_8, %c36], %7 {strides = array<i32>} : memref<32x40xbf16, #tpu.memory_space<vmem>>, vector<32x4xbf16>,
    %9 = arith.truncf %4 : vector<32x32xf32> to vector<32x32xbf16>
    %c0_9 = arith.constant 0 : index
    %c4 = arith.constant 4 : index
    %10 = vector.load %arg12[%c0_9, %c4] : memref<32x40xbf16, #tpu.memory_space<vmem>>, vector<32x32xbf16>
    tpu.vector_store %arg12[%c0_9, %c4], %9 {strides = array<i32>} : memref<32x40xbf16, #tpu.memory_space<vmem>>, vector<32x32xbf16>,
    %c0_10 = arith.constant 0 : index
    %c0_11 = arith.constant 0 : index
    %11 = vector.load %arg12[%c0_10, %c0_11] : memref<32x40xbf16, #tpu.memory_space<vmem>>, vector<32x32xbf16>
    %c0_12 = arith.constant 0 : index
    %c1 = arith.constant 1 : index
    %12 = vector.load %arg12[%c0_12, %c1] : memref<32x40xbf16, #tpu.memory_space<vmem>>, vector<32x32xbf16>
    %c0_13 = arith.constant 0 : index
    %c2 = arith.constant 2 : index
    %13 = vector.load %arg12[%c0_13, %c2] : memref<32x40xbf16, #tpu.memory_space<vmem>>, vector<32x32xbf16>
    %c0_14 = arith.constant 0 : index
    %c3 = arith.constant 3 : index
    %14 = vector.load %arg12[%c0_14, %c3] : memref<32x40xbf16, #tpu.memory_space<vmem>>, vector<32x32xbf16>
    %c0_15 = arith.constant 0 : index
    %c4_16 = arith.constant 4 : index
    %15 = vector.load %arg12[%c0_15, %c4_16] : memref<32x40xbf16, #tpu.memory_space<vmem>>, vector<32x32xbf16>
    %c0_17 = arith.constant 0 : index
    %c5 = arith.constant 5 : index
    %16 = vector.load %arg12[%c0_17, %c5] : memref<32x40xbf16, #tpu.memory_space<vmem>>, vector<32x32xbf16>
    %c0_18 = arith.constant 0 : index
    %c6 = arith.constant 6 : index
    %17 = vector.load %arg12[%c0_18, %c6] : memref<32x40xbf16, #tpu.memory_space<vmem>>, vector<32x32xbf16>
    %c0_19 = arith.constant 0 : index
    %c7 = arith.constant 7 : index
    %18 = vector.load %arg12[%c0_19, %c7] : memref<32x40xbf16, #tpu.memory_space<vmem>>, vector<32x32xbf16>
    %c0_20 = arith.constant 0 : index
    %c8 = arith.constant 8 : index
    %19 = vector.load %arg12[%c0_20, %c8] : memref<32x40xbf16, #tpu.memory_space<vmem>>, vector<32x32xbf16>
    %20 = tpu.concatenate %11, %12, %13, %14, %15, %16, %17, %18, %19 in 0 : vector<32x32xbf16>, vector<32x32xbf16>, vector<32x32xbf16>, vector<32x32xbf16>, vector<32x32xbf16>, vector<32x32xbf16>, vector<32x32xbf16>, vector<32x32xbf16>, vector<32x32xbf16> -> vector<288x32xbf16>
    %c0_21 = arith.constant 0 : index
    %c0_22 = arith.constant 0 : index
    %21 = vector.load %arg4[%c0_21, %c0_22] : memref<32x288xbf16, #tpu.memory_space<vmem>>, vector<32x288xbf16>
    %cst_23 = arith.constant dense<0.000000e+00> : vector<32x32xf32>
    %22 = tpu.matmul %21, %20, %cst_23 {dimension_numbers = #tpu.dot_dimension_numbers<[1], [0], [0], [1], [0, 0, 1, 1], [], []>} : vector<32x288xbf16>, vector<288x32xbf16>, vector<32x32xf32> -> vector<32x32xf32>
    %23 = arith.addf %4, %22 : vector<32x32xf32>
    %c0_24 = arith.constant 0 : index
    %c0_25 = arith.constant 0 : index
    %24 = vector.load %arg5[%c0_24, %c0_25] : memref<32x1xf32, #tpu.memory_space<vmem>>, vector<32x1xf32>
    %25 = vector.broadcast %24 : vector<32x1xf32> to vector<32x32xf32>
    %26 = arith.mulf %23, %25 : vector<32x32xf32>
    %c0_26 = arith.constant 0 : index
    %c0_27 = arith.constant 0 : index
    %27 = vector.load %arg6[%c0_26, %c0_27] : memref<32x1xf32, #tpu.memory_space<vmem>>, vector<32x1xf32>
    %28 = vector.broadcast %27 : vector<32x1xf32> to vector<32x32xf32>
    %29 = arith.addf %26, %28 : vector<32x32xf32>
    %cst_28 = arith.constant 0.000000e+00 : f32
    %30 = vector.broadcast %cst_28 : f32 to vector<32x32xf32>
    %31 = arith.maximumf %29, %30 : vector<32x32xf32>
    %32 = tpu.iota {dimensions = array<i32: 0>} : vector<32x2xi32>
    %33 = tpu.iota {dimensions = array<i32: 1>} : vector<32x2xi32>
    %c16_i32 = arith.constant 16 : i32
    %34 = vector.broadcast %c16_i32 : i32 to vector<32x2xi32>
    %35 = arith.muli %33, %34 : vector<32x2xi32>
    %36 = arith.subi %32, %35 : vector<32x2xi32>
    %c4_i32 = arith.constant 4 : i32
    %37 = vector.broadcast %c4_i32 : i32 to vector<32x2xi32>
    %38 = arith.cmpi sge, %36, %37 : vector<32x2xi32>
    %c12_i32 = arith.constant 12 : i32
    %39 = vector.broadcast %c12_i32 : i32 to vector<32x2xi32>
    %40 = arith.cmpi slt, %36, %39 : vector<32x2xi32>
    %41 = arith.andi %38, %40 : vector<32x2xi1>
    %cst_29 = arith.constant 1.000000e+00 : f32
    %cst_30 = arith.constant 0.000000e+00 : f32
    %42 = vector.broadcast %cst_29 : f32 to vector<32x2xf32>
    %43 = vector.broadcast %cst_30 : f32 to vector<32x2xf32>
    %44 = arith.select %41, %42, %43 : vector<32x2xi1>, vector<32x2xf32>
    %45 = arith.truncf %44 : vector<32x2xf32> to vector<32x2xbf16>
    %46 = arith.truncf %31 : vector<32x32xf32> to vector<32x32xbf16>
    %cst_31 = arith.constant dense<0.000000e+00> : vector<32x2xf32>
    %47 = tpu.matmul %46, %45, %cst_31 {dimension_numbers = #tpu.dot_dimension_numbers<[1], [0], [0], [1], [0, 0, 1, 1], [], []>} : vector<32x32xbf16>, vector<32x2xbf16>, vector<32x2xf32> -> vector<32x2xf32>
    %cst_32 = arith.constant 1.250000e-01 : f32
    %48 = vector.broadcast %cst_32 : f32 to vector<32x2xf32>
    %49 = arith.mulf %47, %48 : vector<32x2xf32>
    %c0_33 = arith.constant 0 : index
    %c0_34 = arith.constant 0 : index
    %50 = vector.load %arg7[%c0_33, %c0_34] : memref<2x32xf32, #tpu.memory_space<vmem>>, vector<2x32xf32>
    %cst_35 = arith.constant dense<0.000000e+00> : vector<2x2xf32>
    %51 = tpu.matmul %50, %49, %cst_35 {dimension_numbers = #tpu.dot_dimension_numbers<[1], [0], [0], [1], [0, 0, 1, 1], [], []>} : vector<2x32xf32>, vector<32x2xf32>, vector<2x2xf32> -> vector<2x2xf32>
    %cst_36 = arith.constant 0.000000e+00 : f32
    %52 = vector.broadcast %cst_36 : f32 to vector<2x2xf32>
    %53 = arith.maximumf %51, %52 : vector<2x2xf32>
    %c0_37 = arith.constant 0 : index
    %c0_38 = arith.constant 0 : index
    %54 = vector.load %arg8[%c0_37, %c0_38] : memref<32x2xf32, #tpu.memory_space<vmem>>, vector<32x2xf32>
    %cst_39 = arith.constant dense<0.000000e+00> : vector<32x2xf32>
    %55 = tpu.matmul %54, %53, %cst_39 {dimension_numbers = #tpu.dot_dimension_numbers<[1], [0], [0], [1], [0, 0, 1, 1], [], []>} : vector<32x2xf32>, vector<2x2xf32>, vector<32x2xf32> -> vector<32x2xf32>
    %56 = arith.negf %55 : vector<32x2xf32>
    %57 = math.exp %56 : vector<32x2xf32>
    %cst_40 = arith.constant 1.000000e+00 : f32
    %58 = vector.broadcast %cst_40 : f32 to vector<32x2xf32>
    %59 = arith.addf %58, %57 : vector<32x2xf32>
    %60 = arith.divf %58, %59 : vector<32x2xf32>
    %61 = tpu.iota {dimensions = array<i32: 1>} : vector<2x32xi32>
    %62 = tpu.iota {dimensions = array<i32: 0>} : vector<2x32xi32>
    %c16_i32_41 = arith.constant 16 : i32
    %63 = vector.broadcast %c16_i32_41 : i32 to vector<2x32xi32>
    %64 = arith.muli %62, %63 : vector<2x32xi32>
    %65 = arith.subi %61, %64 : vector<2x32xi32>
    %c0_i32 = arith.constant 0 : i32
    %66 = vector.broadcast %c0_i32 : i32 to vector<2x32xi32>
    %67 = arith.cmpi sge, %65, %66 : vector<2x32xi32>
    %c16_i32_42 = arith.constant 16 : i32
    %68 = vector.broadcast %c16_i32_42 : i32 to vector<2x32xi32>
    %69 = arith.cmpi slt, %65, %68 : vector<2x32xi32>
    %70 = arith.andi %67, %69 : vector<2x32xi1>
    %cst_43 = arith.constant 1.000000e+00 : f32
    %cst_44 = arith.constant 0.000000e+00 : f32
    %71 = vector.broadcast %cst_43 : f32 to vector<2x32xf32>
    %72 = vector.broadcast %cst_44 : f32 to vector<2x32xf32>
    %73 = arith.select %70, %71, %72 : vector<2x32xi1>, vector<2x32xf32>
    %74 = arith.truncf %73 : vector<2x32xf32> to vector<2x32xbf16>
    %75 = arith.truncf %60 : vector<32x2xf32> to vector<32x2xbf16>
    %cst_45 = arith.constant dense<0.000000e+00> : vector<32x32xf32>
    %76 = tpu.matmul %75, %74, %cst_45 {dimension_numbers = #tpu.dot_dimension_numbers<[1], [0], [0], [1], [0, 0, 1, 1], [], []>} : vector<32x2xbf16>, vector<2x32xbf16>, vector<32x32xf32> -> vector<32x32xf32>
    %cst_46 = arith.constant 1.000000e+00 : f32
    %77 = vector.broadcast %cst_46 : f32 to vector<32x32xf32>
    %78 = arith.addf %77, %76 : vector<32x32xf32>
    %79 = arith.mulf %31, %78 : vector<32x32xf32>
    %c0_47 = arith.constant 0 : index
    %c0_48 = arith.constant 0 : index
    %80 = vector.load %arg9[%c0_47, %c0_48] : memref<32x8xbf16, #tpu.memory_space<vmem>>, vector<32x8xbf16>
    %c0_49 = arith.constant 0 : index
    %c0_50 = arith.constant 0 : index
    %81 = vector.load %arg2[%c0_49, %c0_50] : memref<8x32xbf16, #tpu.memory_space<vmem>>, vector<8x32xbf16>
    %cst_51 = arith.constant dense<0.000000e+00> : vector<32x32xf32>
    %82 = tpu.matmul %80, %81, %cst_51 {dimension_numbers = #tpu.dot_dimension_numbers<[1], [0], [0], [1], [0, 0, 1, 1], [], []>} : vector<32x8xbf16>, vector<8x32xbf16>, vector<32x32xf32> -> vector<32x32xf32>
    %c0_52 = arith.constant 0 : index
    %c0_53 = arith.constant 0 : index
    %83 = vector.load %arg10[%c0_52, %c0_53] : memref<32x1xf32, #tpu.memory_space<vmem>>, vector<32x1xf32>
    %84 = vector.broadcast %83 : vector<32x1xf32> to vector<32x32xf32>
    %85 = arith.addf %82, %84 : vector<32x32xf32>
    %86 = arith.addf %79, %85 : vector<32x32xf32>
    %cst_54 = arith.constant 0.000000e+00 : f32
    %87 = vector.broadcast %cst_54 : f32 to vector<32x32xf32>
    %88 = arith.maximumf %86, %87 : vector<32x32xf32>
    %c0_55 = arith.constant 0 : index
    %c0_56 = arith.constant 0 : index
    %89 = vector.load %arg11[%c0_55, %c0_56] : memref<32x32xf32, #tpu.memory_space<vmem>>, vector<32x32xf32>
    tpu.vector_store %arg11[%c0_55, %c0_56], %88 {strides = array<i32>} : memref<32x32xf32, #tpu.memory_space<vmem>>, vector<32x32xf32>,
    return
  }
  func.func @transform_0(%arg0: i32) -> (i32, i32) {
    %c0_i32 = arith.constant 0 : i32
    %c0_i32_0 = arith.constant 0 : i32
    return %c0_i32, %arg0 : i32, i32
  }
  func.func @transform_1(%arg0: i32) -> (i32, i32) {
    %c0_i32 = arith.constant 0 : i32
    %c0_i32_0 = arith.constant 0 : i32
    return %c0_i32, %arg0 : i32, i32
  }
  func.func @transform_2(%arg0: i32) -> (i32, i32) {
    %c0_i32 = arith.constant 0 : i32
    %c0_i32_0 = arith.constant 0 : i32
    %c0_i32_1 = arith.constant 0 : i32
    return %c0_i32, %c0_i32_0 : i32, i32
  }
  func.func @transform_3(%arg0: i32) -> (i32, i32) {
    %c0_i32 = arith.constant 0 : i32
    %c0_i32_0 = arith.constant 0 : i32
    %c0_i32_1 = arith.constant 0 : i32
    return %c0_i32, %c0_i32_0 : i32, i32
  }
  func.func @transform_4(%arg0: i32) -> (i32, i32) {
    %c0_i32 = arith.constant 0 : i32
    %c0_i32_0 = arith.constant 0 : i32
    %c0_i32_1 = arith.constant 0 : i32
    return %c0_i32, %c0_i32_0 : i32, i32
  }
  func.func @transform_5(%arg0: i32) -> (i32, i32) {
    %c0_i32 = arith.constant 0 : i32
    %c0_i32_0 = arith.constant 0 : i32
    %c0_i32_1 = arith.constant 0 : i32
    return %c0_i32, %c0_i32_0 : i32, i32
  }
  func.func @transform_6(%arg0: i32) -> (i32, i32) {
    %c0_i32 = arith.constant 0 : i32
    %c0_i32_0 = arith.constant 0 : i32
    %c0_i32_1 = arith.constant 0 : i32
    return %c0_i32, %c0_i32_0 : i32, i32
  }
  func.func @transform_7(%arg0: i32) -> (i32, i32) {
    %c0_i32 = arith.constant 0 : i32
    %c0_i32_0 = arith.constant 0 : i32
    %c0_i32_1 = arith.constant 0 : i32
    return %c0_i32, %c0_i32_0 : i32, i32
  }
  func.func @transform_8(%arg0: i32) -> (i32, i32) {
    %c0_i32 = arith.constant 0 : i32
    %c0_i32_0 = arith.constant 0 : i32
    %c0_i32_1 = arith.constant 0 : i32
    return %c0_i32, %c0_i32_0 : i32, i32
  }
  func.func @transform_9(%arg0: i32) -> (i32, i32) {
    %c0_i32 = arith.constant 0 : i32
    %c0_i32_0 = arith.constant 0 : i32
    %c0_i32_1 = arith.constant 0 : i32
    return %c0_i32, %c0_i32_0 : i32, i32
  }
  func.func @transform_10(%arg0: i32) -> (i32, i32) {
    %c0_i32 = arith.constant 0 : i32
    %c0_i32_0 = arith.constant 0 : i32
    return %c0_i32, %arg0 : i32, i32
  }
}

</mosaic_0001>

<bundles_post_ra>
// kernel: tpu_custom_call.1
= control target key start
LH: loop header
LB: loop body
LE: loop exit
PB: predicated region body
PF: predicated region fallthrough
CT: control target
= control target key end

     0   :  { %15 = vsyncpa [#allocation4], 0  ;;  %s1901_s0 = inlined_call_operand.hbm [shape: bf16[73,32], index: 0, kind: input, shape index: {}]   ;;  %s1902_s1 = inlined_call_operand.hbm [shape: bf16[8,32], index: 1, kind: input, shape index: {}]   ;;  %s1903_s2 = inlined_call_operand.hbm [shape: bf16[32,73], index: 2, kind: input, shape index: {}]   ;;  %s1904_s3 = inlined_call_operand.hbm [shape: bf16[32,288], index: 3, kind: input, shape index: {}]   ;;  %s1905_s4 = inlined_call_operand.hbm [shape: f32[32,1], index: 4, kind: input, shape index: {}]   ;;  %s1906_s5 = inlined_call_operand.hbm [shape: f32[32,1], index: 5, kind: input, shape index: {}]   ;;  %s1907_s6 = inlined_call_operand.hbm [shape: f32[2,32], index: 6, kind: input, shape index: {}]   ;;  %s1908_s7 = inlined_call_operand.hbm [shape: f32[32,2], index: 7, kind: input, shape index: {}]   ;;  %s1909_s8 = inlined_call_operand.hbm [shape: bf16[32,8], index: 8, kind: input, shape index: {}]   ;;  %s1910_s9 = inlined_call_operand.hbm [shape: f32[32,1], index: 9, kind: input, shape index: {}]   ;;  %s1911_s10 = inlined_call_operand.hbm [shape: f32[32,32], index: 10, kind: output, shape index: {}]  }
   0x1   :  { %16 = vsyncpa [#allocation7], 0 }
   0x2   :  { %17 = vsyncpa [#allocation10], 0 }
   0x3   :  { %18 = vsyncpa [#allocation13], 0 }
   0x4   :  { %19 = vsyncpa [#allocation16], 0 }
   0x5   :  { %20 = vsyncpa [#allocation19], 0 }
   0x6   :  { %21 = vsyncpa [#allocation5], 0  ;;  %s1556_s13 = smov [#allocation6]   ;;  %s1557_s15 = smov [#allocation9]  }
   0x7   :  { %s40_s14 = sshll.u32 %s1556_s13, 4  ;;  %s61_s16 = sshll.u32 %s1557_s15, 4  ;;  %s41_s14 = int_to_ptr.vmem [resolvable:$true] %s40_s14  ;;  %s1642_s16 = int_to_ptr.vmem [resolvable:$true] %s61_s16 }
   0x8   :  { %s1300_s19 = scalar_lea.hbm %s1902_s1, 64 }
   0x9   :  { %p1301_p0 = scmp.ne.s32.totalorder %s1902_s1, %s1300_s19  ;;  %p1304_p1 = scmp.lt.u32.totalorder %s1300_s19, %s1902_s1 }
   0xb   :  { %p1306_p2 = pnand %p1304_p1, %p1301_p0 }
   0xd   :  { %1309 = shalt.err (!%p1306_p2)
}
   0xe   :  { %s1310_s24 = scalar_lea.vmem %s41_s14, 64  ;;  %p1315_p4 = scmp.lt.s32.totalorder %s41_s14, %s41_s14 }
   0xf   :  { %p1311_p3 = scmp.ne.s32.totalorder %s41_s14, %s1310_s24  ;;  %p1316_p5 = scmp.lt.s32.totalorder %s1310_s24, %s1310_s24 }
  0x11   :  { %p1317_p6 = por %p1316_p5, %p1315_p4 }
  0x13   :  { %p1318_p7 = pnand %p1317_p6, %p1311_p3 }
  0x15   :  { %1321 = shalt.err (!%p1318_p7)
}
  0x16   :  { %43 = dma.hbm_to_vmem [thread:$0]  %s1902_s1, 64, %s41_s14, [#allocation7]  }
  0x17   :  { %s1322_s29 = scalar_lea.hbm %s1904_s3, 768 }
  0x18   :  { %p1323_p8 = scmp.ne.s32.totalorder %s1904_s3, %s1322_s29  ;;  %p1326_p9 = scmp.lt.u32.totalorder %s1322_s29, %s1904_s3 }
  0x1a   :  { %p1328_p10 = pnand %p1326_p9, %p1323_p8 }
  0x1c   :  { %1331 = shalt.err (!%p1328_p10)
}
  0x1d   :  { %s1332_s15 = scalar_lea.vmem %s1642_s16, 768  ;;  %p1337_p12 = scmp.lt.s32.totalorder %s1642_s16, %s1642_s16 }
  0x1e   :  { %p1333_p11 = scmp.ne.s32.totalorder %s1642_s16, %s1332_s15  ;;  %p1338_p13 = scmp.lt.s32.totalorder %s1332_s15, %s1332_s15 }
  0x20   :  { %p1339_p0 = por %p1338_p13, %p1337_p12 }
  0x22   :  { %p1340_p1 = pnand %p1339_p0, %p1333_p11 }
  0x24   :  { %1343 = shalt.err (!%p1340_p1)
}
  0x25   :  { %s1558_s1 = smov 192   ;;  %s1559_s14 = smov 12  }
  0x26   :  { %67 = dma.hbm_to_vmem [thread:$0]  %s1904_s3, 768, %s1642_s16, [#allocation10], %s1558_s1, %s1558_s1, %s1559_s14  }
  0x27   :  { %s1560_s19 = smov [#allocation12]   ;;  %s1561_s21 = smov [#allocation15]  }
  0x28   :  { %s85_s20 = sshll.u32 %s1560_s19, 4  ;;  %s107_s22 = sshll.u32 %s1561_s21, 4  ;;  %s86_s20 = int_to_ptr.vmem [resolvable:$true] %s85_s20  ;;  %s1673_s22 = int_to_ptr.vmem [resolvable:$true] %s107_s22 }
  0x29   :  { %s1344_s25 = scalar_lea.hbm %s1906_s5, 512 }
  0x2a   :  { %p1345_p2 = scmp.ne.s32.totalorder %s1906_s5, %s1344_s25  ;;  %p1348_p3 = scmp.lt.u32.totalorder %s1344_s25, %s1906_s5 }
  0x2c   :  { %p1350_p4 = pnand %p1348_p3, %p1345_p2 }
  0x2e   :  { %1353 = shalt.err (!%p1350_p4)
}
  0x2f   :  { %s1354_s3 = scalar_lea.vmem %s86_s20, 512  ;;  %p1359_p6 = scmp.lt.s32.totalorder %s86_s20, %s86_s20 }
  0x30   :  { %p1355_p5 = scmp.ne.s32.totalorder %s86_s20, %s1354_s3  ;;  %p1360_p7 = scmp.lt.s32.totalorder %s1354_s3, %s1354_s3 }
  0x32   :  { %p1361_p8 = por %p1360_p7, %p1359_p6 }
  0x34   :  { %p1362_p9 = pnand %p1361_p8, %p1355_p5 }
  0x36   :  { %1365 = shalt.err (!%p1362_p9)
}
  0x37   :  { %s1562_s16 = smov 128   ;;  %s1563_s30 = smov 8  }
  0x38   :  { %91 = dma.hbm_to_vmem [thread:$0]  %s1906_s5, 512, %s86_s20, [#allocation13], %s1562_s16, %s1562_s16, %s1563_s30  }
  0x39   :  { %s1366_s1 = scalar_lea.hbm %s1908_s7, 512 }
  0x3a   :  { %p1367_p10 = scmp.ne.s32.totalorder %s1908_s7, %s1366_s1  ;;  %p1370_p11 = scmp.lt.u32.totalorder %s1366_s1, %s1908_s7 }
  0x3c   :  { %p1372_p12 = pnand %p1370_p11, %p1367_p10 }
  0x3e   :  { %1375 = shalt.err (!%p1372_p12)
}
  0x3f   :  { %s1376_s21 = scalar_lea.vmem %s1673_s22, 512  ;;  %p1381_p0 = scmp.lt.s32.totalorder %s1673_s22, %s1673_s22 }
  0x40   :  { %p1377_p13 = scmp.ne.s32.totalorder %s1673_s22, %s1376_s21  ;;  %p1382_p1 = scmp.lt.s32.totalorder %s1376_s21, %s1376_s21 }
  0x42   :  { %p1383_p2 = por %p1382_p1, %p1381_p0 }
  0x44   :  { %p1384_p3 = pnand %p1383_p2, %p1377_p13 }
  0x46   :  { %1387 = shalt.err (!%p1384_p3)
}
  0x47   :  { %113 = dma.hbm_to_vmem [thread:$0]  %s1908_s7, 512, %s1673_s22, [#allocation16], %s1562_s16, %s1562_s16, %s1563_s30  }
  0x48   :  { %s1564_s23 = smov [#allocation3]   ;;  %s1388_s27 = scalar_lea.hbm %s1901_s0, 640 }
  0x49   :  { %s27_s24 = sshll.u32 %s1564_s23, 4  ;;  %p1389_p4 = scmp.ne.s32.totalorder %s1901_s0, %s1388_s27  ;;  %s28_s24 = int_to_ptr.vmem [resolvable:$true] %s27_s24 }
  0x4a   :  { %p1392_p5 = scmp.lt.u32.totalorder %s1388_s27, %s1901_s0 }
  0x4c   :  { %p1394_p6 = pnand %p1392_p5, %p1389_p4 }
  0x4e   :  { %1397 = shalt.err (!%p1394_p6)
}
  0x4f   :  { %s1398_s12 = scalar_lea.vmem %s28_s24, 640  ;;  %p1403_p8 = scmp.lt.s32.totalorder %s28_s24, %s28_s24 }
  0x50   :  { %p1399_p7 = scmp.ne.s32.totalorder %s28_s24, %s1398_s12  ;;  %p1404_p9 = scmp.lt.s32.totalorder %s1398_s12, %s1398_s12 }
  0x52   :  { %p1405_p10 = por %p1404_p9, %p1403_p8 }
  0x54   :  { %p1406_p11 = pnand %p1405_p10, %p1399_p7 }
  0x56   :  { %1409 = shalt.err (!%p1406_p11)
}
  0x57   :  { %s1565_s7 = smov 64   ;;  %s1566_s22 = smov 4  }
  0x58   :  { %33 = dma.hbm_to_vmem [thread:$0]  %s1901_s0, 640, %s28_s24, [#allocation4], %s1565_s7, %s1565_s7, %s1566_s22  }
  0x59   :  { %s1567_s1 = smov [#allocation8]   ;;  %s1568_s17 = smov [#allocation11]  }
  0x5a   :  { %s49_s14 = sshll.u32 %s1567_s1, 4  ;;  %s73_s18 = sshll.u32 %s1568_s17, 4  ;;  %s50_s14 = int_to_ptr.vmem [resolvable:$true] %s49_s14  ;;  %s74_s18 = int_to_ptr.vmem [resolvable:$true] %s73_s18 }
  0x5b   :  { %s1410_s5 = scalar_lea.hbm %s1903_s2, 256 }
  0x5c   :  { %p1411_p12 = scmp.ne.s32.totalorder %s1903_s2, %s1410_s5  ;;  %p1414_p13 = scmp.lt.u32.totalorder %s1410_s5, %s1903_s2 }
  0x5e   :  { %p1416_p0 = pnand %p1414_p13, %p1411_p12 }
  0x60   :  { %1419 = shalt.err (!%p1416_p0)
}
  0x61   :  { %s1420_s0 = scalar_lea.vmem %s50_s14, 256  ;;  %p1425_p2 = scmp.lt.s32.totalorder %s50_s14, %s50_s14 }
  0x62   :  { %p1421_p1 = scmp.ne.s32.totalorder %s50_s14, %s1420_s0  ;;  %p1426_p3 = scmp.lt.s32.totalorder %s1420_s0, %s1420_s0 }
  0x64   :  { %p1427_p4 = por %p1426_p3, %p1425_p2 }
  0x66   :  { %p1428_p5 = pnand %p1427_p4, %p1421_p1 }
  0x68   :  { %1431 = shalt.err (!%p1428_p5)
}
  0x69   :  { %55 = dma.hbm_to_vmem [thread:$0]  %s1903_s2, 256, %s50_s14, [#allocation7], %s1565_s7, %s1565_s7, %s1566_s22  }
  0x6a   :  { %s1432_s3 = scalar_lea.hbm %s1905_s4, 512 }
  0x6b   :  { %p1433_p6 = scmp.ne.s32.totalorder %s1905_s4, %s1432_s3  ;;  %p1436_p7 = scmp.lt.u32.totalorder %s1432_s3, %s1905_s4 }
  0x6d   :  { %p1438_p8 = pnand %p1436_p7, %p1433_p6 }
  0x6f   :  { %1441 = shalt.err (!%p1438_p8)
}
  0x70   :  { %s1442_s1 = scalar_lea.vmem %s74_s18, 512  ;;  %p1447_p10 = scmp.lt.s32.totalorder %s74_s18, %s74_s18 }
  0x71   :  { %p1443_p9 = scmp.ne.s32.totalorder %s74_s18, %s1442_s1  ;;  %p1448_p11 = scmp.lt.s32.totalorder %s1442_s1, %s1442_s1 }
  0x73   :  { %p1449_p12 = por %p1448_p11, %p1447_p10 }
  0x75   :  { %p1450_p13 = pnand %p1449_p12, %p1443_p9 }
  0x77   :  { %1453 = shalt.err (!%p1450_p13)
}
  0x78   :  { %79 = dma.hbm_to_vmem [thread:$0]  %s1905_s4, 512, %s74_s18, [#allocation10], %s1562_s16, %s1562_s16, %s1563_s30  }
  0x79   :  { %s1569_s17 = smov [#allocation14]   ;;  %s1570_s21 = smov [#allocation17]  }
  0x7a   :  { %s98_s19 = sshll.u32 %s1569_s17, 4  ;;  %s119_s5 = sshll.u32 %s1570_s21, 4  ;;  %s99_s19 = int_to_ptr.vmem [resolvable:$true] %s98_s19  ;;  %s120_s5 = int_to_ptr.vmem [resolvable:$true] %s119_s5 }
  0x7b   :  { %s1454_s25 = scalar_lea.hbm %s1907_s6, 32 }
  0x7c   :  { %p1455_p0 = scmp.ne.s32.totalorder %s1907_s6, %s1454_s25  ;;  %p1458_p1 = scmp.lt.u32.totalorder %s1454_s25, %s1907_s6 }
  0x7e   :  { %p1460_p2 = pnand %p1458_p1, %p1455_p0 }
  0x80   :  { %1463 = shalt.err (!%p1460_p2)
}
  0x81   :  { %s1464_s4 = scalar_lea.vmem %s99_s19, 32  ;;  %p1469_p4 = scmp.lt.s32.totalorder %s99_s19, %s99_s19 }
  0x82   :  { %p1465_p3 = scmp.ne.s32.totalorder %s99_s19, %s1464_s4  ;;  %p1470_p5 = scmp.lt.s32.totalorder %s1464_s4, %s1464_s4 }
  0x84   :  { %p1471_p6 = por %p1470_p5, %p1469_p4 }
  0x86   :  { %p1472_p7 = pnand %p1471_p6, %p1465_p3 }
  0x88   :  { %1475 = shalt.err (!%p1472_p7)
}
  0x89   :  { %101 = dma.hbm_to_vmem [thread:$0]  %s1907_s6, 32, %s99_s19, [#allocation13]  }
  0x8a   :  { %s1476_s11 = scalar_lea.hbm %s1909_s8, 256 }
  0x8b   :  { %p1477_p8 = scmp.ne.s32.totalorder %s1909_s8, %s1476_s11  ;;  %p1480_p9 = scmp.lt.u32.totalorder %s1476_s11, %s1909_s8 }
  0x8d   :  { %p1482_p10 = pnand %p1480_p9, %p1477_p8 }
  0x8f   :  { %1485 = shalt.err (!%p1482_p10)
}
  0x90   :  { %s1486_s2 = scalar_lea.vmem %s120_s5, 256  ;;  %p1491_p12 = scmp.lt.s32.totalorder %s120_s5, %s120_s5 }
  0x91   :  { %p1487_p11 = scmp.ne.s32.totalorder %s120_s5, %s1486_s2  ;;  %p1492_p13 = scmp.lt.s32.totalorder %s1486_s2, %s1486_s2 }
  0x93   :  { %p1493_p0 = por %p1492_p13, %p1491_p12 }
  0x95   :  { %p1494_p1 = pnand %p1493_p0, %p1487_p11 }
  0x97   :  { %1497 = shalt.err (!%p1494_p1)
}
  0x98   :  { %125 = dma.hbm_to_vmem [thread:$0]  %s1909_s8, 256, %s120_s5, [#allocation16], %s1565_s7, %s1565_s7, %s1566_s22  }
  0x99   :  { %s1571_s17 = smov [#allocation18]   ;;  %s1498_s23 = scalar_lea.hbm %s1910_s9, 512 }
  0x9a   :  { %s131_s19 = sshll.u32 %s1571_s17, 4  ;;  %p1499_p2 = scmp.ne.s32.totalorder %s1910_s9, %s1498_s23  ;;  %s132_s19 = int_to_ptr.vmem [resolvable:$true] %s131_s19 }
  0x9b   :  { %p1502_p3 = scmp.lt.u32.totalorder %s1498_s23, %s1910_s9 }
  0x9d   :  { %p1504_p4 = pnand %p1502_p3, %p1499_p2 }
  0x9f   :  { %1507 = shalt.err (!%p1504_p4)
}
  0xa0   :  { %s1508_s27 = scalar_lea.vmem %s132_s19, 512  ;;  %p1513_p6 = scmp.lt.s32.totalorder %s132_s19, %s132_s19 }
  0xa1   :  { %p1509_p5 = scmp.ne.s32.totalorder %s132_s19, %s1508_s27  ;;  %p1514_p7 = scmp.lt.s32.totalorder %s1508_s27, %s1508_s27 }
  0xa3   :  { %p1515_p8 = por %p1514_p7, %p1513_p6 }
  0xa5   :  { %p1516_p9 = pnand %p1515_p8, %p1509_p5 }
  0xa7   :  { %1519 = shalt.err (!%p1516_p9)
}
  0xa8   :  { %137 = dma.hbm_to_vmem [thread:$0]  %s1910_s9, 512, %s132_s19, [#allocation19], %s1562_s16, %s1562_s16, %s1563_s30  }
  0xa9   :  { %1542 = dma.done.wait [#allocation4], 640  }
  0xaa   :  { %1543 = vsyncadd [#allocation4], 4294966656 }
  0xab   :  { %1544 = dma.done.wait [#allocation7], 320  }
  0xac   :  { %1545 = vsyncadd [#allocation7], 4294966976 }
  0xad   :  { %1546 = dma.done.wait [#allocation10], 1280  }
  0xae   :  { %1547 = vsyncadd [#allocation10], 4294966016 }
  0xaf   :  { %1548 = dma.done.wait [#allocation13], 544  }
  0xb0   :  { %1549 = vsyncadd [#allocation13], 4294966752 }
  0xb1   :  { %1550 = dma.done.wait [#allocation16], 768  }
  0xb2   :  { %1551 = vsyncadd [#allocation16], 4294966528 }
  0xb3   :  { %1552 = dma.done.wait [#allocation19], 512  }
  0xb4   :  { %1553 = vsyncadd [#allocation19], 4294966784  ;;  %v1267_v0 = vld [vmem:[#allocation3] sm:$0xff]   ;;  %v1268_v1 = vld [vmem:[#allocation3 + $0x8] sm:$0xff]   ;;  %vm229_vm0 = vcmask 1043456   ;;  %vm230_vm1 = vcmask 1044480   ;;  %v567_v60 = vlaneseq }
  0xb5   :  { %1165 = vmatprep.subr.bf16.mxu0 %v1267_v0  ;;  %v1269_v2 = vld [vmem:[#allocation3 + $0x10] sm:$0xff]   ;;  %vm222_vm2 = vcmask 596992   ;;  %v1572_v3 = vmov 65535   ;;  %v1270_v6 = vld [vmem:[#allocation3 + $0x18] sm:$0xff]   ;;  %v1271_v7 = vld [vmem:[#allocation3 + $0x20] sm:$0x1f]  }
  0xb6   :  { %1166 = vmatpush3.bf16.msra.mxu0 %v1267_v0  ;;  %v231_v4 = vsel %vm229_vm0, 4294967295, %v1572_v3  ;;  %v1272_v5 = vld [vmem:[#allocation8] sm:$0xff]   ;;  %v1273_v10 = vld [vmem:[#allocation8 + $0x8] sm:$0xff]   ;;  %vm289_vm3 = vcmask 31744   ;;  %vm292_vm4 = vcmask 326944   ;;  %v1573_v11 = vmov 0  }
  0xb7   :  { %1167 = vmatprep.subr.bf16.mxu0 %v1268_v1  ;;  %1175 = vmatprep.mubr.msk.bf16.mxu0 %vm222_vm2, %v1272_v5  ;;  %v232_v8 = vsel %vm230_vm1, %v231_v4, 0  ;;  %290 = vst.msk [vmem:[#allocation2] sm:$0xff] %vm289_vm3, %v1573_v11  ;;  %291 = vst.msk [vmem:[#allocation2 + $0x8] sm:$0xff] %vm289_vm3, %v1573_v11  ;;  %vm305_vm5 = vcmask 293920   ;;  %s1574_s9 = smov 123   ;;  %s1575_s5 = smov 124  }
  0xb8   :  { %v234_v9 = vand.u32 %v1271_v7, %v232_v8  ;;  %1266 = vset.pattern.permute.xlu1 %v1573_v11  ;;  %1265 = vset.pattern.permute.xlu0 %v1573_v11  ;;  %293 = vst.msk [vmem:[#allocation2] sm:$0xff] %vm292_vm4, %v1573_v11  ;;  %294 = vst.msk [vmem:[#allocation2 + $0x8] sm:$0xff] %vm292_vm4, %v1573_v11  ;;  %s1576_s4 = smov 122   ;;  %s1577_s18 = smov 127   ;;  %v1276_v26 = vld [vmem:[#allocation9 + $0x4] ss:$12 sps:$4 sm:$0xff]  }
  0xb9   :  { %s1579_s28 = smov 126   ;;  %437 = vmatprep.mubr.bf16.mxu1 %v1276_v26  ;;  %v1277_v27 = vld [vmem:[#allocation9 + $0x8] ss:$12 sps:$4 sm:$0xff]   ;;  %vm398_vm6 = vcmask 261120   ;;  %s1580_s29 = smov 120   ;;  %v508_v30 = vld [vmem:[#allocation11 + $0x8] sm:$0xff] }
  0xba   :  { %1168 = vmatpush3.bf16.msra.mxu0 %v1268_v1  ;;  %s1581_s3 = smov 125   ;;  %v507_v28 = vld [vmem:[#allocation11] sm:$0xff]  ;;  %v510_v29 = vld [vmem:[#allocation11 + $0x18] sm:$0xff]  ;;  %v536_v31 = vld [vmem:[#allocation12 + $0x8] sm:$0xff]  ;;  %v1824_v61 = vshrl.u32 %v567_v60, 7  ;;  %v1826_v62 = vand.u32 127, %v567_v60 }
  0xbb   :  { %1169 = vmatprep.subr.bf16.mxu0 %v1269_v2  ;;  %v509_v32 = vld [vmem:[#allocation11 + $0x10] sm:$0xff]  ;;  %v538_v33 = vld [vmem:[#allocation12 + $0x18] sm:$0xff]  ;;  %v535_v34 = vld [vmem:[#allocation12] sm:$0xff]  ;;  %v1582_v7 = vmov 1.0|1.0   ;;  %s1586_s11 = smov [#allocation20]  }
  0xbc   :  { %v941_v35 = vld [vmem:[#allocation18 + $0x8] sm:$0xff]  ;;  %v537_v36 = vld [vmem:[#allocation12 + $0x10] sm:$0xff]  ;;  %v942_v39 = vld [vmem:[#allocation18 + $0x10] sm:$0xff]  ;;  %v569_v63 = vadd.s32 8, %v1824_v61  ;;  %v574_v0 = vmul.u32 16, %v1826_v62  ;;  %v570_v3 = vadd.s32 16, %v1824_v61 }
  0xbd   :  { %v943_v37 = vld [vmem:[#allocation18 + $0x18] sm:$0xff]  ;;  %v940_v38 = vld [vmem:[#allocation18] sm:$0xff]  ;;  %v571_v4 = vadd.s32 24, %v1824_v61  ;;  %s1050_s12 = sshll.u32 %s1586_s11, 4  ;;  %s1051_s12 = int_to_ptr.vmem [resolvable:$true] %s1050_s12 }
  0xbe   :  { %1170 = vmatpush3.bf16.msra.mxu0 %v1269_v2  ;;  %v1274_v55 = vld [vmem:[#allocation9] ss:$12 sps:$4 sm:$0xff]   ;;  %v1279_v56 = vld [vmem:[#allocation9 + $0x1c] ss:$12 sps:$4 sm:$0xff]   ;;  %v1281_v59 = vld [vmem:[#allocation9 + $0x18] ss:$12 sps:$4 sm:$0xff]   ;;  %v575_v1 = vsub.s32 %v1824_v61, %v574_v0  ;;  %v576_v2 = vsub.s32 %v569_v63, %v574_v0  ;;  %v577_v5 = vsub.s32 %v570_v3, %v574_v0  ;;  %p1525_p11 = scmp.lt.s32.totalorder %s1051_s12, %s1051_s12 }
  0xbf   :  { %1171 = vmatprep.subr.bf16.mxu0 %v1270_v6  ;;  %v1278_v58 = vld [vmem:[#allocation9 + $0x20] ss:$12 sps:$4 sm:$0xff]   ;;  %s1520_s13 = scalar_lea.vmem %s1051_s12, 512 }
  0xc0   :  { %vm579_vm7 = vcmp.ge.s32.totalorder %v575_v1, 4  ;;  %vm580_vm8 = vcmp.ge.s32.totalorder %v576_v2, 4  ;;  %vm583_vm9 = vcmp.lt.s32.totalorder %v575_v1, 12  ;;  %vm584_vm10 = vcmp.lt.s32.totalorder %v576_v2, 12  ;;  %p1521_p10 = scmp.ne.s32.totalorder %s1051_s12, %s1520_s13  ;;  %p1526_p12 = scmp.lt.s32.totalorder %s1520_s13, %s1520_s13 }
  0xc1   :  { %vm587_vm11 = vmand %vm579_vm7, %vm583_vm9  ;;  %vm581_vm14 = vcmp.ge.s32.totalorder %v577_v5, 4  ;;  %vm585_vm1 = vcmp.lt.s32.totalorder %v577_v5, 12  ;;  %vm1584_vm7 = vmmov 0   ;;  %v733_v5 = vld [vmem:[#allocation15] sm:$0xff]  ;;  %vm750_vm9 = vcmask 1041408  }
  0xc2   :  { %1172 = vmatpush3.bf16.msra.mxu0 %v1270_v6  ;;  %vm588_vm12 = vmand %vm580_vm8, %vm584_vm10  ;;  %v578_v6 = vsub.s32 %v571_v4, %v574_v0  ;;  %v658_v4 = vld [vmem:[#allocation14] sm:$0x3]  ;;  %vm737_vm8 = vcmask 15360   ;;  %vm974_vm10 = vcmask 64512   ;;  %p1527_p13 = por %p1526_p12, %p1525_p11 }
  0xc3   :  { %1173 = vmatprep.subr.bf16.mxu0 %v234_v9  ;;  %vm1084_vm13 = vmpackc.low %vm588_vm12, %vm587_vm11 }
  0xc4   :  { %vm582_vm15 = vcmp.ge.s32.totalorder %v578_v6, 4  ;;  %vm589_vm3 = vmand %vm581_vm14, %vm585_vm1  ;;  %p1528_p0 = pnand %p1527_p13, %p1521_p10 }
  0xc6   :  { %1174 = vmatpush3.bf16.msra.mxu0 %v234_v9 }
  0xc9   :  { %1176 = vmatmul.mubr.msk.bf16.vlgmr.msra.gmra.mrb[0].mxu0 %vm222_vm2, %v1273_v10  ;;  %vm586_vm2 = vcmp.lt.s32.totalorder %v578_v6, 12 }
  0xca   :  { %1183 = vmatprep.mubr.msk.bf16.mxu0 %vm398_vm6, %v1277_v27  ;;  %vm590_vm4 = vmand %vm582_vm15, %vm586_vm2 }
 0x19c   :  { %v1800_v12 = vpop.f32.mrb[0].mxu0 }
 0x19d   :  { %v1802_v13 = vpop.f32.mrb[1].mxu0  ;;  %v287_v20 = vmax.f32 %v1800_v12, 0.0 }
 0x19e   :  { %v1804_v14 = vpop.f32.mrb[2].mxu0  ;;  %v285_v16 = vmax.f32 %v1802_v13, 0.0 }
 0x19f   :  { %v1806_v15 = vpop.f32.mrb[3].mxu0  ;;  %v288_v18 = vmax.f32 %v1804_v14, 0.0 }
 0x1a0   :  { %v286_v17 = vmax.f32 %v1806_v15, 0.0 }
 0x1a1   :  { %v296_v21 = vpack.c.bf16 %v288_v18, %v287_v20 }
 0x1a2   :  { %v295_v19 = vpack.c.bf16 %v286_v17, %v285_v16 }
 0x1a4   :  { %299 = vrot.lane.b32.xlu0 %v295_v19, %s1566_s22 }
 0x1a8   :  { %301 = vrot.lane.b32.xlu0 %v296_v21, %s1566_s22  ;;  %s1578_s22 = smov 121  }
 0x216   :  { %v300_v22 = vpop.permute.xlu0 %299 }
 0x217   :  { %306 = vst.msk [vmem:[#allocation2] sm:$0xff] %vm305_vm5, %v300_v22 }
 0x21a   :  { %v302_v23 = vpop.permute.xlu0 %301 }
 0x21b   :  { %307 = vst.msk [vmem:[#allocation2 + $0x8] sm:$0xff] %vm305_vm5, %v302_v23  ;;  %vm1086_vm5 = vmpackc.low %vm590_vm4, %vm589_vm3 }
 0x21e   :  { %v308_v24 = vld [vmem:[#allocation2] sm:$0xff] }
 0x21f   :  { %336 = vrot.lane.b32.xlu0 %v308_v24, %s1574_s9  ;;  %330 = vrot.lane.b32.xlu1 %v308_v24, %s1575_s5 }
 0x222   :  { %v309_v25 = vld [vmem:[#allocation2 + $0x8] sm:$0xff] }
 0x223   :  { %338 = vrot.lane.b32.xlu0 %v309_v25, %s1574_s9  ;;  %332 = vrot.lane.b32.xlu1 %v309_v25, %s1575_s5 }
 0x227   :  { %342 = vrot.lane.b32.xlu0 %v308_v24, %s1576_s4  ;;  %312 = vrot.lane.b32.xlu1 %v308_v24, %s1577_s18 }
 0x22b   :  { %344 = vrot.lane.b32.xlu0 %v309_v25, %s1576_s4  ;;  %314 = vrot.lane.b32.xlu1 %v309_v25, %s1577_s18 }
 0x22f   :  { %348 = vrot.lane.b32.xlu0 %v308_v24, %s1578_s22  ;;  %318 = vrot.lane.b32.xlu1 %v308_v24, %s1579_s28 }
 0x233   :  { %350 = vrot.lane.b32.xlu0 %v309_v25, %s1578_s22  ;;  %320 = vrot.lane.b32.xlu1 %v309_v25, %s1579_s28 }
 0x237   :  { %354 = vrot.lane.b32.xlu0 %v308_v24, %s1580_s29  ;;  %324 = vrot.lane.b32.xlu1 %v308_v24, %s1581_s3 }
 0x23b   :  { %326 = vrot.lane.b32.xlu1 %v309_v25, %s1581_s3  ;;  %513 = vperm.xlu0 %1265, %v507_v28  }
 0x23f   :  { %356 = vrot.lane.b32.xlu1 %v309_v25, %s1580_s29  ;;  %528 = vperm.xlu0 %1265, %v510_v29  }
 0x243   :  { %518 = vperm.xlu1 %1266, %v508_v30   ;;  %546 = vperm.xlu0 %1265, %v536_v31  }
 0x247   :  { %523 = vperm.xlu1 %1266, %v509_v32   ;;  %556 = vperm.xlu0 %1265, %v538_v33  }
 0x24b   :  { %541 = vperm.xlu1 %1266, %v535_v34   ;;  %951 = vperm.xlu0 %1265, %v941_v35  }
 0x24f   :  { %551 = vperm.xlu1 %1266, %v537_v36   ;;  %961 = vperm.xlu0 %1265, %v943_v37  }
 0x253   :  { %946 = vperm.xlu1 %1266, %v940_v38  }
 0x257   :  { %956 = vperm.xlu1 %1266, %v942_v39  }
 0x291   :  { %v331_v40 = vpop.permute.xlu1 %330  ;;  %v337_v41 = vpop.permute.xlu0 %336 }
 0x292   :  { %1113 = vmatprep.subr.bf16.mxu1 %v331_v40 }
 0x293   :  { %1114 = vmatpush3.bf16.msra.mxu1 %v308_v24 }
 0x295   :  { %v333_v42 = vpop.permute.xlu1 %332  ;;  %v339_v43 = vpop.permute.xlu0 %338 }
 0x296   :  { %1115 = vmatprep.subr.bf16.mxu1 %v333_v42 }
 0x297   :  { %1116 = vmatpush3.bf16.msra.mxu1 %v309_v25 }
 0x298   :  { %1117 = vmatprep.subr.bf16.mxu1 %v337_v41 }
 0x299   :  { %v313_v44 = vpop.permute.xlu1 %312  ;;  %v343_v45 = vpop.permute.xlu0 %342 }
 0x29b   :  { %1118 = vmatpush3.bf16.msra.mxu1 %v313_v44 }
 0x29c   :  { %1119 = vmatprep.subr.bf16.mxu1 %v339_v43 }
 0x29d   :  { %v315_v46 = vpop.permute.xlu1 %314  ;;  %v345_v47 = vpop.permute.xlu0 %344 }
 0x29f   :  { %1120 = vmatpush3.bf16.msra.mxu1 %v315_v46 }
 0x2a0   :  { %1121 = vmatprep.subr.bf16.mxu1 %v343_v45 }
 0x2a1   :  { %v319_v48 = vpop.permute.xlu1 %318  ;;  %v349_v49 = vpop.permute.xlu0 %348 }
 0x2a3   :  { %1122 = vmatpush3.bf16.msra.mxu1 %v319_v48 }
 0x2a4   :  { %1123 = vmatprep.subr.bf16.mxu1 %v345_v47 }
 0x2a5   :  { %v321_v50 = vpop.permute.xlu1 %320  ;;  %v351_v51 = vpop.permute.xlu0 %350 }
 0x2a7   :  { %1124 = vmatpush3.bf16.msra.mxu1 %v321_v50 }
 0x2a8   :  { %1125 = vmatprep.subr.bf16.mxu1 %v349_v49 }
 0x2a9   :  { %v325_v52 = vpop.permute.xlu1 %324  ;;  %v355_v53 = vpop.permute.xlu0 %354 }
 0x2aa   :  { %1179 = vmatprep.subr.bf16.mxu0 %v355_v53 }
 0x2ab   :  { %1126 = vmatpush3.bf16.msra.mxu1 %v325_v52  ;;  %1180 = vmatpush3.bf16.msra.mxu0 %v355_v53 }
 0x2ac   :  { %1127 = vmatprep.subr.bf16.mxu1 %v351_v51 }
 0x2ad   :  { %v327_v54 = vpop.permute.xlu1 %326 }
 0x2af   :  { %1128 = vmatpush3.bf16.msra.mxu1 %v327_v54 }
 0x2b1   :  { %v357_v57 = vpop.permute.xlu1 %356 }
 0x2b2   :  { %438 = vmatmul.mubr.bf16.vlgmr.msra.gmra.mrb[0].mxu1 %v1274_v55  ;;  %1181 = vmatprep.subr.bf16.mxu0 %v357_v57  ;;  %v1585_v55 = vmov 0.0  }
 0x2b3   :  { %1182 = vmatpush3.bf16.msra.mxu0 %v357_v57  ;;  %445 = vmatprep.mubr.bf16.mxu1 %v1279_v56 }
 0x2b4   :  { %1187 = vmatprep.subr.msk.bf16.mxu0 %vm1084_vm13, %v1582_v7 }
 0x2b6   :  { %1184 = vmatmul.mubr.msk.bf16.vlgmr.msra.gmra.mrb[4].mxu0 %vm398_vm6, %v1278_v58 }
 0x2b7   :  { %1188 = vmatpush3.bf16.msk.msra.mxu0 %vm1084_vm13, %v1582_v7 }
 0x2b8   :  { %1189 = vmatprep.subr.msk.bf16.mxu0 %vm1086_vm5, %v1582_v7 }
 0x2ba   :  { %446 = vmatmul.mubr.bf16.gmra.mrb[4].mxu1 %v1281_v59  ;;  %v514_v10 = vpop.permute.xlu0 %513 }
 0x2bb   :  { %1190 = vmatpush3.bf16.msk.msra.mxu0 %vm1086_vm5, %v1582_v7  ;;  %1203 = vmatprep.mubr.msk.f32.mxu1 %vm1584_vm7, %v1585_v55  ;;  %v939_v7 = vld [vmem:[#allocation6] sm:$0xf] }
 0x2be   :  { %v529_v29 = vpop.permute.xlu0 %528 }
 0x2c2   :  { %v519_v8 = vpop.permute.xlu1 %518  ;;  %v547_v45 = vpop.permute.xlu0 %546 }
 0x2c6   :  { %v524_v25 = vpop.permute.xlu1 %523  ;;  %v557_v12 = vpop.permute.xlu0 %556 }
 0x2ca   :  { %v542_v39 = vpop.permute.xlu1 %541 }
 0x2ce   :  { %v552_v49 = vpop.permute.xlu1 %551 }
 0x385   :  { %v1129_v9 = vpop.f32.mrb[0].mxu1 }
 0x386   :  { %v1130_v11 = vpop.f32.mrb[1].mxu1 }
 0x387   :  { %v1131_v19 = vadd.f32 %v1130_v11, %v1129_v9  ;;  %v1132_v21 = vpop.f32.mrb[2].mxu1  ;;  %v735_v11 = vld [vmem:[#allocation15 + $0x10] sm:$0xff] }
 0x388   :  { %v1133_v22 = vpop.f32.mrb[3].mxu1 }
 0x389   :  { %v1134_v23 = vadd.f32 %v1133_v22, %v1132_v21  ;;  %v1185_v24 = vpop.f32.mrb[4].mxu0  ;;  %v736_v21 = vld [vmem:[#allocation15 + $0x18] sm:$0xff]  ;;  %v1282_v22 = vld [vmem:[#allocation17] sm:$0xff]  }
 0x38a   :  { %v488_v26 = vpop.f32.mrb[5].mxu0 }
 0x38b   :  { %v489_v27 = vadd.f32 %v1131_v19, %v488_v26  ;;  %v1186_v28 = vpop.f32.mrb[6].mxu0  ;;  %v982_v19 = vsel %vm229_vm0, %v939_v7, 0 }
 0x38c   :  { %v491_v30 = vpop.f32.mrb[7].mxu0 }
 0x38d   :  { %v503_v31 = vadd.f32 %v489_v27, %v285_v16  ;;  %v492_v32 = vadd.f32 %v1134_v23, %v491_v30  ;;  %v1135_v33 = vpop.f32.mrb[4].mxu1  ;;  %v1283_v23 = vld [vmem:[#allocation17 + $0x8] sm:$0xff]  }
 0x38e   :  { %v1136_v34 = vpop.f32.mrb[5].mxu1 }
 0x38f   :  { %v531_v35 = vmul.f32 %v514_v10, %v503_v31  ;;  %v504_v36 = vadd.f32 %v492_v32, %v286_v17  ;;  %v1137_v37 = vadd.f32 %v1136_v34, %v1135_v33  ;;  %v1138_v38 = vpop.f32.mrb[6].mxu1  ;;  %v734_v10 = vld [vmem:[#allocation15 + $0x8] sm:$0xff] }
 0x390   :  { %v1139_v40 = vpop.f32.mrb[7].mxu1 }
 0x391   :  { %v1837_v41 = vadd.f32 %v542_v39, %v531_v35  ;;  %v532_v42 = vmul.f32 %v519_v8, %v504_v36  ;;  %v497_v43 = vadd.f32 %v1185_v24, %v1137_v37  ;;  %v1140_v44 = vadd.f32 %v1139_v40, %v1138_v38 }
 0x392   :  { %v863_v24 = vmul.u32 16, %v1824_v61 }
 0x393   :  { %v1839_v46 = vadd.f32 %v547_v45, %v532_v42  ;;  %v505_v13 = vadd.f32 %v497_v43, %v287_v20  ;;  %v500_v16 = vadd.f32 %v1186_v28, %v1140_v44  ;;  %v563_v47 = vmax.f32 %v1837_v41, 0.0 }
 0x395   :  { %v564_v15 = vmax.f32 %v1839_v46, 0.0  ;;  %v533_v17 = vmul.f32 %v524_v25, %v505_v13  ;;  %v506_v48 = vadd.f32 %v500_v16, %v288_v18  ;;  %v1583_v18 = vmov 0.0|0.0  }
 0x396   :  { %1226 = vmatprep.subr.bf16.mxu1 %v1583_v18  ;;  %v864_v25 = vsub.s32 %v1826_v62, %v863_v24 }
 0x397   :  { %v1847_v50 = vadd.f32 %v552_v49, %v533_v17  ;;  %v534_v51 = vmul.f32 %v529_v29, %v506_v48  ;;  %v597_v52 = vpack.c.bf16 %v564_v15, %v563_v47 }
 0x398   :  { %vm865_vm11 = vcmp.ge.s32.totalorder %v864_v25, 0  ;;  %vm866_vm12 = vcmp.lt.s32.totalorder %v864_v25, 16 }
 0x399   :  { %v1853_v20 = vadd.f32 %v557_v12, %v534_v51  ;;  %1191 = vmatprep.mubr.msk.bf16.mxu0 %vm398_vm6, %v597_v52  ;;  %v565_v53 = vmax.f32 %v1847_v50, 0.0  ;;  %vm867_vm13 = vmand %vm865_vm11, %vm866_vm12 }
 0x39a   :  { %v868_v26 = vsel %vm867_vm13, 1.0, %v1585_v55 }
 0x39b   :  { %v566_v54 = vmax.f32 %v1853_v20, 0.0  ;;  %v869_v27 = vpack.c.bf16 %v868_v26, %v868_v26 }
 0x39d   :  { %v598_v14 = vpack.c.bf16 %v566_v54, %v565_v53 }
 0x39f   :  { %1192 = vmatmul.mubr.msk.bf16.vlgmr.msra.gmra.mrb[8].mxu0 %vm398_vm6, %v598_v14  ;;  %v947_v14 = vpop.permute.xlu1 %946 }
 0x3a0   :  { %1208 = vmatprep.mubr.msk.f32.mxu0 %vm737_vm8, %v733_v5 }
 0x472   :  { %v1193_v56 = vpop.f32.mrb[8].mxu0 }
 0x473   :  { %v639_v57 = vpop.f32.mrb[9].mxu0  ;;  %v656_v59 = vmul.f32 0.125, %v1193_v56 }
 0x474   :  { %v1194_v58 = vpop.f32.mrb[10].mxu0  ;;  %v654_v0 = vmul.f32 0.125, %v639_v57 }
 0x475   :  { %v657_v60 = vmul.f32 0.125, %v1194_v58  ;;  %v642_v63 = vpop.f32.mrb[11].mxu0  ;;  %v957_v58 = vpop.permute.xlu1 %956 }
 0x476   :  { %v655_v1 = vmul.f32 0.125, %v642_v63 }
 0x477   :  { %v1230_v2 = vpack.c.bf16 %v657_v60, %v656_v59 }
 0x478   :  { %v1227_v3 = vpack.c.bf16 %v655_v1, %v654_v0 }
 0x47a   :  { %1228 = vmatpush3.bf16.msra.mxu1 %v1227_v3 }
 0x47b   :  { %1229 = vmatprep.subr.bf16.mxu1 %v1583_v18  ;;  %v952_v18 = vpop.permute.xlu0 %951 }
 0x47e   :  { %1231 = vmatpush3.bf16.msra.mxu1 %v1230_v2 }
 0x47f   :  { %v962_v3 = vpop.permute.xlu0 %961 }
 0x481   :  { %1204 = vmatmul.mubr.msk.f32.vlgmr.msra.gmra.mrb[8].mxu1 %vm398_vm6, %v658_v4 }
 0x554   :  { %v728_v6 = vpop.f32.mrb[8].mxu1 }
 0x555   :  { %v732_v8 = vmax.f32 %v728_v6, 0.0  ;;  %v1205_v9 = vpop.f32.mrb[9].mxu1 }
 0x557   :  { %1206 = vmatprep.subr.msk.mxu0 %vm750_vm9, %v732_v8 }
 0x558   :  { %1207 = vmatpush3.msk.msra.mxu0 %vm750_vm9, %v732_v8 }
 0x559   :  { %1209 = vmatmul.mubr.msk.f32.vlgmr.msra.gmra.mrb[12].mxu0 %vm737_vm8, %v734_v10  ;;  %1233 = vmatprep.subr.msk.bf16.mxu0 %vm229_vm0, %v939_v7  ;;  %vm878_vm0 = vcmask 1040384  }
 0x55a   :  { %1211 = vmatprep.mubr.msk.f32.mxu0 %vm737_vm8, %v735_v11  ;;  %1221 = vmatpush3.bf16.msra.mxu0 %v982_v19  ;;  %v880_v28 = vsel %vm878_vm0, %v869_v27, 0 }
 0x55b   :  { %1232 = vmatprep.subr.msk.bf16.mxu1 %vm878_vm0, %v869_v27 }
 0x55c   :  { %1215 = vmatpush3.bf16.msra.mxu1 %v880_v28 }
 0x55d   :  { %1212 = vmatmul.mubr.msk.f32.gmra.mrb[14].mxu0 %vm737_vm8, %v736_v21 }
 0x55e   :  { %1222 = vmatprep.mubr.msk.bf16.mxu0 %vm974_vm10, %v1282_v22 }
 0x561   :  { %1223 = vmatmul.mubr.msk.bf16.vlgmr.msra.gmra.mrb[16].mxu0 %vm974_vm10, %v1283_v23 }
 0x62c   :  { %v1210_v29 = vpop.f32.mrb[12].mxu0 }
 0x62d   :  { %v1097_v30 = vmul.f32 -1.442695, %v1210_v29  ;;  %v820_v31 = vpop.f32.mrb[13].mxu0 }
 0x62e   :  { %v1096_v32 = vmul.f32 -1.442695, %v820_v31 }
 0x62f   :  { %1284 = vpow2.f32 %v1097_v30 }
 0x630   :  { %1286 = vpow2.f32 %v1096_v32  ;;  %v1213_v33 = vpop.f32.mrb[14].mxu0 }
 0x631   :  { %v1099_v34 = vmul.f32 -1.442695, %v1213_v33  ;;  %v830_v61 = vpop.f32.mrb[15].mxu0 }
 0x632   :  { %v1098_v35 = vmul.f32 -1.442695, %v830_v61 }
 0x633   :  { %1288 = vpow2.f32 %v1099_v34 }
 0x634   :  { %1290 = vpow2.f32 %v1098_v35  ;;  %v1224_v62 = vpop.f32.mrb[16].mxu0 }
 0x635   :  { %v1018_v36 = vpop.f32.mrb[17].mxu0  ;;  %v1027_v63 = vadd.f32 %v1224_v62, %v957_v58 }
 0x636   :  { %v1225_v37 = vpop.f32.mrb[18].mxu0  ;;  %v1019_v4 = vadd.f32 %v1018_v36, %v947_v14 }
 0x637   :  { %v1021_v38 = vpop.f32.mrb[19].mxu0  ;;  %v1030_v7 = vadd.f32 %v1225_v37, %v962_v3 }
 0x638   :  { %v1022_v10 = vadd.f32 %v1021_v38, %v952_v18 }
 0x639   :  { %v1285_v39 = vpop.eup %1284 }
 0x63a   :  { %v1287_v40 = vpop.eup %1286  ;;  %v852_v42 = vadd.f32 1.0, %v1285_v39 }
 0x63b   :  { %v851_v43 = vadd.f32 1.0, %v1287_v40 }
 0x63c   :  { %1292 = vrcp.f32 %v852_v42 }
 0x63d   :  { %v1289_v44 = vpop.eup %1288  ;;  %1294 = vrcp.f32 %v851_v43 }
 0x63e   :  { %v1291_v45 = vpop.eup %1290  ;;  %v854_v13 = vadd.f32 1.0, %v1289_v44 }
 0x63f   :  { %v853_v16 = vadd.f32 1.0, %v1291_v45 }
 0x640   :  { %1296 = vrcp.f32 %v854_v13 }
 0x641   :  { %1298 = vrcp.f32 %v853_v16 }
 0x646   :  { %v1293_v17 = vpop.eup %1292 }
 0x647   :  { %v1295_v48 = vpop.eup %1294 }
 0x648   :  { %v870_v49 = vpack.c.bf16 %v1293_v17, %v1295_v48 }
 0x64a   :  { %v1297_v51 = vpop.eup %1296  ;;  %1216 = vmatprep.mubr.msk.bf16.mxu1 %vm737_vm8, %v870_v49 }
 0x64b   :  { %v1299_v52 = vpop.eup %1298 }
 0x64c   :  { %v871_v12 = vpack.c.bf16 %v1297_v51, %v1299_v52 }
 0x64e   :  { %1217 = vmatmul.mubr.msk.bf16.vlgmr.msra.gmra.mrb[12].mxu1 %vm737_vm8, %v871_v12 }
 0x721   :  { %v1218_v55 = vpop.f32.mrb[12].mxu1 }
 0x722   :  { %v925_v56 = vadd.f32 1.0, %v1218_v55  ;;  %v916_v57 = vpop.f32.mrb[13].mxu1 }
 0x723   :  { %v917_v59 = vadd.f32 1.0, %v916_v57  ;;  %v1219_v60 = vpop.f32.mrb[14].mxu1 }
 0x724   :  { %v933_v0 = vmul.f32 %v925_v56, %v565_v53  ;;  %v928_v1 = vadd.f32 1.0, %v1219_v60  ;;  %v919_v2 = vpop.f32.mrb[15].mxu1 }
 0x725   :  { %v931_v5 = vmul.f32 %v917_v59, %v563_v47  ;;  %v920_v6 = vadd.f32 1.0, %v919_v2 }
 0x726   :  { %v1035_v8 = vadd.f32 %v1027_v63, %v933_v0  ;;  %v934_v9 = vmul.f32 %v928_v1, %v566_v54 }
 0x727   :  { %v1033_v11 = vadd.f32 %v1019_v4, %v931_v5  ;;  %v932_v19 = vmul.f32 %v920_v6, %v564_v15 }
 0x728   :  { %v1039_v50 = vmax.f32 %v1035_v8, 0.0  ;;  %v1036_v53 = vadd.f32 %v1030_v7, %v934_v9 }
 0x729   :  { %v1037_v21 = vmax.f32 %v1033_v11, 0.0  ;;  %v1034_v22 = vadd.f32 %v1022_v10, %v932_v19 }
 0x72a   :  { %1043 = vst.msk [vmem:[#allocation20 + $0x10] sm:$0xff] %vm398_vm6, %v1039_v50  ;;  %v1040_v41 = vmax.f32 %v1036_v53, 0.0 }
 0x72b   :  { %1041 = vst.msk [vmem:[#allocation20] sm:$0xff] %vm398_vm6, %v1037_v21  ;;  %v1038_v47 = vmax.f32 %v1034_v22, 0.0 }
 0x72c   :  { %1044 = vst.msk [vmem:[#allocation20 + $0x18] sm:$0xff] %vm398_vm6, %v1040_v41 }
 0x72d   :  { %1042 = vst.msk [vmem:[#allocation20 + $0x8] sm:$0xff] %vm398_vm6, %v1038_v47 }
 0x72e   :  { %1531 = shalt.err (!%p1528_p0)
}
 0x72f   :  { %s1532_s2 = scalar_lea.hbm %s1911_s10, 512 }
 0x730   :  { %p1533_p1 = scmp.ne.s32.totalorder %s1911_s10, %s1532_s2  ;;  %p1536_p2 = scmp.lt.u32.totalorder %s1532_s2, %s1911_s10 }
 0x732   :  { %p1538_p3 = pnand %p1536_p2, %p1533_p1 }
 0x734   :  { %1541 = shalt.err (!%p1538_p3)
}
 0x735   :  { %1056 = dma.vmem_to_hbm [thread:$0]  %s1051_s12, 512, %s1911_s10, [#allocation5], %s1562_s16, %s1562_s16, %s1563_s30  }
 0x736   :  { %1554 = dma.done.wait [#allocation5], 512  }
 0x737   :  { %1555 = vsyncadd [#allocation5], 4294966784 }
 0x738   :  { %1060 = vsyncpa [#allocation4], 1 }
 0x739   :  { %1061 = vsyncpa [#allocation7], 1 }
 0x73a   :  { %1062 = vsyncpa [#allocation10], 1 }
 0x73b   :  { %1063 = vsyncpa [#allocation13], 1 }
 0x73c   :  { %1064 = vsyncpa [#allocation16], 1 }
 0x73d   :  { %1065 = vsyncpa [#allocation19], 1 }
 0x73e   :  { %1066 = vsyncpa [#allocation5], 1 }

</bundles_post_ra>
